<compile_context>
chip_gen: v5e
topology: v5e:2x2
jax: 0.10.0
libtpu: 0.0.40
codegen_flags: <defaults>
</compile_context>

<pallas_src>
import math
import functools

import jax
import jax.numpy as jnp
from jax import lax
from jax.experimental import pallas as pl
from jax.experimental.pallas import tpu as pltpu

_VMEM_BUDGET = 44 * 1024 * 1024  # conservative across v5e/v6e (128 MiB) and v7x (64 MiB)


def _sdpa_kernel(q_ref, k_ref, v_ref, mask_ref, ctx_ref, attn_ref, *, scale):
    # Block shapes: q (1, TQ, D), k/v (1, Lk, D), mask/attn (1, TQ, Lk),
    # ctx (1, TQ, D).  One grid point = one (batch*head, q-tile) pair.
    q = q_ref[0]            # [TQ, D]  (native dtype)
    k = k_ref[0]            # [Lk, D]
    v = v_ref[0]            # [Lk, D]
    mask = mask_ref[0]      # [TQ, Lk] bool (True = masked out)

    # scores = Q @ K^T, contracting the last axis of both so K stays in its
    # natural [Lk, D] layout (no transpose before the MXU push); f32 accumulate.
    scores = lax.dot_general(
        q, k,
        dimension_numbers=(((1,), (1,)), ((), ())),
        preferred_element_type=jnp.float32,
    )                                                   # [TQ, Lk] f32

    # Scale the f32 scores (exact parity with matmul(Q,K^T)/sqrt(d)), then
    # masked_fill_(attn_mask, -1e9).
    scores = scores * jnp.float32(scale)
    scores = jnp.where(mask, jnp.float32(-1.0e9), scores)

    # Numerically stable softmax over the key axis.  Exact divide: the approx
    # EUP reciprocal previously produced row sums != 1 and failed correctness.
    m = jnp.max(scores, axis=-1, keepdims=True)
    e = jnp.exp(scores - m)
    attn = e / jnp.sum(e, axis=-1, keepdims=True)       # [TQ, Lk] f32

    # context = attn @ V  (feed attn in V's dtype so bf16 inputs hit the bf16
    # MXU path; accumulate in f32).
    context = lax.dot_general(
        attn.astype(v.dtype), v,
        dimension_numbers=(((1,), (0,)), ((), ())),
        preferred_element_type=jnp.float32,
    )                                                   # [TQ, D] f32

    # TODO(synk): nn.Dropout(p=0.1) on the context is stochastic in training
    # mode; eval-mode (identity) semantics are implemented here.  Training
    # dropout could be added with pltpu.prng_seed + pltpu.prng_random_bits.

    attn_ref[0] = attn.astype(attn_ref.dtype)
    ctx_ref[0] = context.astype(ctx_ref.dtype)


def _estimate_vmem_bytes(tq, lk, d, io_itemsize):
    """Rough per-grid-step VMEM footprint (Pallas double-buffers each block)."""
    kv_blk = 2 * lk * d * io_itemsize            # K + V blocks
    q_ctx_blk = 2 * tq * d * io_itemsize         # Q + context blocks
    mask_blk = tq * lk                           # bool mask block (1 byte/elem)
    attn_blk = tq * lk * io_itemsize             # attn output block
    double_buffered = 2 * (kv_blk + q_ctx_blk + mask_blk + attn_blk)
    temporaries = 4 * tq * lk * 4                # f32 scores / exp / attn intermediates
    return double_buffered + temporaries


def _pick_q_tile(lq, lk, d, io_itemsize):
    """Fixed large query tile; grid uses cdiv so the tail block is padded."""
    if lq <= 8:
        return lq
    candidates = ([lq] if lq <= 256 else []) + [t for t in (256, 128, 64, 32, 16, 8) if t < lq]
    for tq in candidates:
        if _estimate_vmem_bytes(tq, lk, d, io_itemsize) <= _VMEM_BUDGET:
            return tq
    return candidates[-1]


@jax.jit
def scaled_dot_product_attention(Q, K, V, attn_mask):
    """Q, K, V: [B, H, L, D]; attn_mask: [B, H, Lq, Lk] (bool or int, True/nonzero = masked)."""
    B, H, Lq, D = Q.shape
    Lk = K.shape[2]
    BH = B * H
    itemsize = jnp.dtype(Q.dtype).itemsize

    # Collapse (B, H) into one leading grid axis; reshape of leading dims is free.
    q3 = Q.reshape(BH, Lq, D)
    k3 = K.reshape(BH, Lk, D)
    v3 = V.reshape(BH, Lk, D)
    mask3 = attn_mask.reshape(BH, Lq, Lk)
    if mask3.dtype != jnp.bool_:
        mask3 = mask3 != 0   # bool callers (the common case) pay no conversion pass

    TQ = _pick_q_tile(Lq, Lk, D, itemsize)
    n_q = pl.cdiv(Lq, TQ)

    est = _estimate_vmem_bytes(TQ, Lk, D, itemsize)
    vmem_limit = int(min(max(32 * 1024 * 1024, 2 * est), 96 * 1024 * 1024))

    kernel = functools.partial(_sdpa_kernel, scale=1.0 / math.sqrt(D))

    ctx, attn = pl.pallas_call(
        kernel,
        out_shape=(
            jax.ShapeDtypeStruct((BH, Lq, D), Q.dtype),     # context
            jax.ShapeDtypeStruct((BH, Lq, Lk), Q.dtype),    # attn (input dtype)
        ),
        grid_spec=pltpu.PrefetchScalarGridSpec(
            num_scalar_prefetch=0,
            grid=(BH, n_q),
            in_specs=[
                pl.BlockSpec((1, TQ, D), lambda g, qi: (g, qi, 0)),   # Q tile
                pl.BlockSpec((1, Lk, D), lambda g, qi: (g, 0, 0)),    # K (reused across qi)
                pl.BlockSpec((1, Lk, D), lambda g, qi: (g, 0, 0)),    # V (reused across qi)
                pl.BlockSpec((1, TQ, Lk), lambda g, qi: (g, qi, 0)),  # mask tile (bool)
            ],
            out_specs=[
                pl.BlockSpec((1, TQ, D), lambda g, qi: (g, qi, 0)),   # context
                pl.BlockSpec((1, TQ, Lk), lambda g, qi: (g, qi, 0)),  # attn (lane-dense)
            ],
        ),
        compiler_params=pltpu.CompilerParams(
            dimension_semantics=("parallel", "parallel"),
            vmem_limit_bytes=vmem_limit,
        ),
    )(q3, k3, v3, mask3)

    return ctx.reshape(B, H, Lq, D), attn.reshape(B, H, Lq, Lk)


def _reference(Q, K, V, attn_mask):
    d = Q.shape[-1]
    scores = jnp.einsum("bhqd,bhkd->bhqk", Q, K, precision="highest").astype(jnp.float32)
    scores = scores / math.sqrt(d)
    scores = jnp.where(attn_mask, jnp.float32(-1.0e9), scores)
    attn = jax.nn.softmax(scores, axis=-1)
    ctx = jnp.einsum("bhqk,bhkd->bhqd", attn, V.astype(jnp.float32), precision="highest")
    return ctx.astype(Q.dtype), attn.astype(Q.dtype)


if __name__ == "__main__":
    key = jax.random.PRNGKey(0)
    kq, kk, kv, km = jax.random.split(key, 4)

    B, H, L, D = 2, 4, 8, 32
    Q = jax.random.normal(kq, (B, H, L, D), dtype=jnp.float32)
    K = jax.random.normal(kk, (B, H, L, D), dtype=jnp.float32)
    V = jax.random.normal(kv, (B, H, L, D), dtype=jnp.float32)
    # Random boolean mask (True = masked out), like a padding/causal mask.
    attn_mask = jax.random.bernoulli(km, p=0.25, shape=(B, H, L, L))

    ctx, attn = scaled_dot_product_attention(Q, K, V, attn_mask)
    jax.block_until_ready((ctx, attn))

    ctx_ref, attn_ref = _reference(Q, K, V, attn_mask)
    # Tolerance is loose enough to absorb any bf16-pass matmul precision for
    # f32 operands on the MXU (kernel) vs. the highest-precision XLA reference;
    # structural/indexing/masking errors would exceed it by orders of magnitude.
    assert jnp.allclose(ctx, ctx_ref, atol=2e-2, rtol=2e-2), float(
        jnp.max(jnp.abs(ctx - ctx_ref)))
    assert jnp.allclose(attn, attn_ref, atol=2e-2, rtol=2e-2), float(
        jnp.max(jnp.abs(attn - attn_ref)))

    print("KERNEL_OK")
</pallas_src>

<mosaic_0001>
module attributes {stable_mosaic.version = 11 : i64} {
  func.func @_sdpa_kernel(%arg0: i32, %arg1: i32, %arg2: memref<1x8x32xf32, #tpu.memory_space<vmem>>, %arg3: memref<1x8x32xf32, #tpu.memory_space<vmem>>, %arg4: memref<1x8x32xf32, #tpu.memory_space<vmem>>, %arg5: memref<1x8x8xi32, #tpu.memory_space<vmem>>, %arg6: memref<1x8x32xf32, #tpu.memory_space<vmem>>, %arg7: memref<1x8x8xf32, #tpu.memory_space<vmem>>) attributes {dimension_semantics = [#tpu.dimension_semantics<parallel>, #tpu.dimension_semantics<parallel>], iteration_bounds = array<i64: 8, 1>, scalar_prefetch = 0 : i64, scratch_operands = 0 : i64, tpu.core_type = #tpu.core_type<tc>, window_params = [{transform_indices = @transform_0, window_bounds = array<i64: 1, 8, 32>}, {transform_indices = @transform_1, window_bounds = array<i64: 1, 8, 32>}, {transform_indices = @transform_2, window_bounds = array<i64: 1, 8, 32>}, {transform_indices = @transform_3, window_bounds = array<i64: 1, 8, 8>}, {transform_indices = @transform_4, window_bounds = array<i64: 1, 8, 32>}, {transform_indices = @transform_5, window_bounds = array<i64: 1, 8, 8>}]} {
    %c0 = arith.constant 0 : index
    %c0_0 = arith.constant 0 : index
    %c0_1 = arith.constant 0 : index
    %0 = vector.load %arg2[%c0, %c0_0, %c0_1] : memref<1x8x32xf32, #tpu.memory_space<vmem>>, vector<1x8x32xf32>
    %1 = vector.shape_cast %0 : vector<1x8x32xf32> to vector<8x32xf32>
    %c0_2 = arith.constant 0 : index
    %c0_3 = arith.constant 0 : index
    %c0_4 = arith.constant 0 : index
    %2 = vector.load %arg3[%c0_2, %c0_3, %c0_4] : memref<1x8x32xf32, #tpu.memory_space<vmem>>, vector<1x8x32xf32>
    %3 = vector.shape_cast %2 : vector<1x8x32xf32> to vector<8x32xf32>
    %c0_5 = arith.constant 0 : index
    %c0_6 = arith.constant 0 : index
    %c0_7 = arith.constant 0 : index
    %4 = vector.load %arg4[%c0_5, %c0_6, %c0_7] : memref<1x8x32xf32, #tpu.memory_space<vmem>>, vector<1x8x32xf32>
    %5 = vector.shape_cast %4 : vector<1x8x32xf32> to vector<8x32xf32>
    %c0_8 = arith.constant 0 : index
    %c0_9 = arith.constant 0 : index
    %c0_10 = arith.constant 0 : index
    %6 = vector.load %arg5[%c0_8, %c0_9, %c0_10] : memref<1x8x8xi32, #tpu.memory_space<vmem>>, vector<1x8x8xi32>
    %7 = vector.shape_cast %6 : vector<1x8x8xi32> to vector<8x8xi32>
    %cst = arith.constant dense<0> : vector<8x8xi32>
    %8 = arith.cmpi ne, %7, %cst : vector<8x8xi32>
    %cst_11 = arith.constant dense<0.000000e+00> : vector<8x8xf32>
    %9 = tpu.matmul %1, %3, %cst_11 {dimension_numbers = #tpu.dot_dimension_numbers<[1], [1], [0], [0], [0, 0, 1, 0], [], []>} : vector<8x32xf32>, vector<8x32xf32>, vector<8x8xf32> -> vector<8x8xf32>
    %cst_12 = arith.constant 0.176776692 : f32
    %10 = vector.broadcast %cst_12 : f32 to vector<8x8xf32>
    %11 = arith.mulf %9, %10 : vector<8x8xf32>
    %cst_13 = arith.constant -1.000000e+09 : f32
    %12 = vector.broadcast %cst_13 : f32 to vector<8x8xf32>
    %13 = arith.select %8, %12, %11 : vector<8x8xi1>, vector<8x8xf32>
    %cst_14 = arith.constant dense<0xFF800000> : vector<8xf32>
    %14 = vector.multi_reduction <maximumf>, %13, %cst_14 [1] : vector<8x8xf32> to vector<8xf32>
    %15 = vector.shape_cast %14 : vector<8xf32> to vector<8x1xf32>
    %16 = vector.broadcast %15 : vector<8x1xf32> to vector<8x8xf32>
    %17 = arith.subf %13, %16 : vector<8x8xf32>
    %18 = math.exp %17 : vector<8x8xf32>
    %cst_15 = arith.constant dense<0.000000e+00> : vector<8xf32>
    %19 = vector.multi_reduction <add>, %18, %cst_15 [1] : vector<8x8xf32> to vector<8xf32>
    %20 = vector.shape_cast %19 : vector<8xf32> to vector<8x1xf32>
    %21 = vector.broadcast %20 : vector<8x1xf32> to vector<8x8xf32>
    %22 = arith.divf %18, %21 : vector<8x8xf32>
    %cst_16 = arith.constant dense<0.000000e+00> : vector<8x32xf32>
    %23 = tpu.matmul %22, %5, %cst_16 {dimension_numbers = #tpu.dot_dimension_numbers<[1], [0], [0], [1], [0, 0, 1, 1], [], []>} : vector<8x8xf32>, vector<8x32xf32>, vector<8x32xf32> -> vector<8x32xf32>
    %c0_17 = arith.constant 0 : index
    %c0_18 = arith.constant 0 : index
    %c0_19 = arith.constant 0 : index
    %24 = vector.load %arg7[%c0_17, %c0_18, %c0_19] : memref<1x8x8xf32, #tpu.memory_space<vmem>>, vector<1x8x8xf32>
    %25 = vector.shape_cast %24 : vector<1x8x8xf32> to vector<8x8xf32>
    %26 = vector.shape_cast %22 : vector<8x8xf32> to vector<1x8x8xf32>
    tpu.vector_store %arg7[%c0_17, %c0_18, %c0_19], %26 {strides = array<i32>} : memref<1x8x8xf32, #tpu.memory_space<vmem>>, vector<1x8x8xf32>,
    %c0_20 = arith.constant 0 : index
    %c0_21 = arith.constant 0 : index
    %c0_22 = arith.constant 0 : index
    %27 = vector.load %arg6[%c0_20, %c0_21, %c0_22] : memref<1x8x32xf32, #tpu.memory_space<vmem>>, vector<1x8x32xf32>
    %28 = vector.shape_cast %27 : vector<1x8x32xf32> to vector<8x32xf32>
    %29 = vector.shape_cast %23 : vector<8x32xf32> to vector<1x8x32xf32>
    tpu.vector_store %arg6[%c0_20, %c0_21, %c0_22], %29 {strides = array<i32>} : memref<1x8x32xf32, #tpu.memory_space<vmem>>, vector<1x8x32xf32>,
    return
  }
  func.func @transform_0(%arg0: i32, %arg1: i32) -> (i32, i32, i32) {
    %c0_i32 = arith.constant 0 : i32
    %c0_i32_0 = arith.constant 0 : i32
    return %arg0, %arg1, %c0_i32 : i32, i32, i32
  }
  func.func @transform_1(%arg0: i32, %arg1: i32) -> (i32, i32, i32) {
    %c0_i32 = arith.constant 0 : i32
    %c0_i32_0 = arith.constant 0 : i32
    %c0_i32_1 = arith.constant 0 : i32
    return %arg0, %c0_i32, %c0_i32_0 : i32, i32, i32
  }
  func.func @transform_2(%arg0: i32, %arg1: i32) -> (i32, i32, i32) {
    %c0_i32 = arith.constant 0 : i32
    %c0_i32_0 = arith.constant 0 : i32
    %c0_i32_1 = arith.constant 0 : i32
    return %arg0, %c0_i32, %c0_i32_0 : i32, i32, i32
  }
  func.func @transform_3(%arg0: i32, %arg1: i32) -> (i32, i32, i32) {
    %c0_i32 = arith.constant 0 : i32
    %c0_i32_0 = arith.constant 0 : i32
    return %arg0, %arg1, %c0_i32 : i32, i32, i32
  }
  func.func @transform_4(%arg0: i32, %arg1: i32) -> (i32, i32, i32) {
    %c0_i32 = arith.constant 0 : i32
    %c0_i32_0 = arith.constant 0 : i32
    return %arg0, %arg1, %c0_i32 : i32, i32, i32
  }
  func.func @transform_5(%arg0: i32, %arg1: i32) -> (i32, i32, i32) {
    %c0_i32 = arith.constant 0 : i32
    %c0_i32_0 = arith.constant 0 : i32
    return %arg0, %arg1, %c0_i32 : i32, i32, i32
  }
}

</mosaic_0001>

<bundles_post_ra>
// kernel: scaled_dot_product_attention.1
= control target key start
LH: loop header
LB: loop body
LE: loop exit
PB: predicated region body
PF: predicated region fallthrough
CT: control target
= control target key end

     0   :  { %11 = vsyncpa [#allocation3], 0  ;;  %s1122_s0 = inlined_call_operand.vmem [shape: f32[8,8,32], index: 0, kind: input, shape index: {}]   ;;  %s1123_s1 = inlined_call_operand.hbm [shape: f32[8,8,32], index: 1, kind: input, shape index: {}]   ;;  %s1124_s2 = inlined_call_operand.hbm [shape: f32[8,8,32], index: 2, kind: input, shape index: {}]   ;;  %s1125_s3 = inlined_call_operand.vmem [shape: s32[8,8,8], index: 3, kind: input, shape index: {}]   ;;  %s1126_s4 = inlined_call_operand.hbm [shape: f32[8,8,32], index: 4, kind: output, shape index: {0}]   ;;  %s1127_s5 = inlined_call_operand.hbm [shape: f32[8,8,8], index: 5, kind: output, shape index: {1}]  }
   0x1   :  { %13 = vsyncpa [#allocation3 + $0x1], 0 }
   0x2   :  { %14 = vsyncpa [#allocation6], 0 }
   0x3   :  { %16 = vsyncpa [#allocation6 + $0x1], 0 }
   0x4   :  { %17 = vsyncpa [#allocation4], 0 }
   0x5   :  { %19 = vsyncpa [#allocation4 + $0x1], 0 }
   0x6   :  { %20 = vsyncpa [#allocation9], 0 }
   0x7   :  { %22 = vsyncpa [#allocation9 + $0x1], 0  ;;  %s961_s18 = smov 0   ;;  %s963_s19 = smov 0  }
   0x8   :  { %s965_s20 = smov 0   ;;  %s967_s21 = smov 0  }
   0x9   :  { %s969_s22 = smov 0   ;;  %s971_s23 = smov 0  }
   0xa LB: > { %1130 = sst [smem:[#allocation14_spill]] %s925_s22  ;;  %s651_s24 = sadd.s32 4294967295, %s929_s23   ;;  %s929_s23 = sphi %s971_s23, %s28_s23   ;;  %s925_s22 = sphi %s969_s22, %s1137_s22   ;;  %s921_s21 = sphi %s967_s21, %s1136_s21   ;;  %s917_s20 = sphi %s965_s20, %s1140_s20   ;;  %s913_s19 = sphi %s963_s19, %s1139_s19   ;;  %s909_s18 = sphi %s961_s18, %s1138_s18  }
   0xb   : > { %s652_s25 = sadd.s32 4294967294, %s929_s23   ;;  %s40_s26 = sadd.s32 1, %s925_s22 }
   0xc   : > { %s75_s27 = sadd.s32 1, %s917_s20  ;;  %p42_p0 = scmp.ge.s32.totalorder %s40_s26, 8 }
   0xd   : > { %p82_p1 = scmp.ne.s32.totalorder %s917_s20, %s913_s19  ;;  %p83_p2 = scmp.eq.s32.totalorder %s929_s23, 0 }
   0xe   : > { %p88_p3 = scmp.ne.s32.totalorder %s913_s19, %s909_s18  ;;  %s1142_s26 = smov (%p42_p0, %s40_s26), 0 }
   0xf   : > { %1131 = sst [smem:[#allocation15_spill]] %s1142_s26  ;;  %p1002_p4 = por %p83_p2, %p82_p1 }
  0x10   : > { %p89_p5 = scmp.eq.s32.totalorder %s651_s24, 0  ;;  %s72_s29 = ssub.s32 %s925_s22, %s1142_s26 }
  0x11   : > { %p168_p6 = scmp.eq.s32.totalorder %s651_s24, 7  ;;  %p73_p7 = scmp.eq.s32.totalorder %s72_s29, 0 }
  0x12   : > { %p1008_p8 = por %p89_p5, %p88_p3  ;;  %p174_p10 = scmp.eq.s32.totalorder %s652_s25, 7 }
  0x13   : > { %p1012_p9 = por %p168_p6, %p82_p1  ;;  %p697_p12 = scmp.lt.s32.totalorder %s929_s23, 8 }
  0x14   : > { %s1017_s7 = scalar_select %p73_p7, %s917_s20, %s75_s27  }
  0x15   : > { %p1019_p11 = por %p174_p10, %p88_p3  ;;  %s232_s9 = sand.u32 1, %s917_s20  }
  0x16   : > { %s655_s10 = sshll.u32 %s232_s9, 3  ;;  %s656_s11 = sshll.u32 %s925_s22, 3 }
  0x17   : > { %s240_s14 = scalar_lea.hbm %s1123_s1, %s656_s11  ;;  %s236_s15 = scalar_lea.vmem [#allocation2], %s655_s10 }
  0x18   : > { %s244_s16 = sshll.u32 %s236_s15, 4  ;;  %s242_s17 = sshll.u32 %s240_s14, 4  ;;  %s245_s16 = int_to_ptr.vmem [resolvable:$true] %s244_s16  ;;  %s243_s17 = int_to_ptr.hbm [resolvable:$true] %s242_s17 }
  0x19   : > { %p684_p13 = pnand %p697_p12, %p1002_p4  ;;  %p659_p0 = scmp.ge.s32.totalorder %s929_s23, 1 }
  0x1a   : > { %p278_p1 = scmp.lt.s32.totalorder %s929_s23, 9  ;;  %s233_s24 = scalar_lea.sflag [#allocation3], %s232_s9 }
  0x1b   : > { %686 = dma.hbm_to_vmem [thread:$0]  (!%p684_p13), %s243_s17, 128, %s245_s16, %s233_s24  }
  0x1c   : > { %p279_p2 = pnand %p659_p0, %p278_p1  ;;  %s259_s29 = scalar_lea.hbm %s1124_s2, %s656_s11 }
  0x1d   : > { %s255_s26 = scalar_lea.vmem [#allocation5], %s655_s10  ;;  %s261_s12 = sshll.u32 %s259_s29, 4  ;;  %s262_s12 = int_to_ptr.hbm [resolvable:$true] %s261_s12 }
  0x1e   : > { %s263_s22 = sshll.u32 %s255_s26, 4  ;;  %s252_s13 = scalar_lea.sflag [#allocation6], %s232_s9  ;;  %s264_s22 = int_to_ptr.vmem [resolvable:$true] %s263_s22 }
  0x1f   : > { %689 = dma.hbm_to_vmem [thread:$0]  (!%p684_p13), %s262_s12, 128, %s264_s22, %s252_s13  }
  0x20   : > { %282 = sbr.rel (%p279_p2) target bundleno = 569 (0x239), region = 36  ;;  %s1037_s28 = sand.u32 (!%p279_p2), 1, %s913_s19  }
  0x21   : > { %s1040_s14 = sshll.u32 (!%p279_p2), %s1037_s28, 3  ;;  %s285_s15 = scalar_lea.sflag (!%p279_p2), [#allocation3], %s1037_s28 }
  0x22   : > { %s288_s16 = scalar_lea.vmem (!%p279_p2), [#allocation2], %s1040_s14 }
  0x25   : > { %892 = dma.done.wait (%p1008_p8), %s285_s15, 128  }
  0x26   : > { %894 = vsyncadd (%p1008_p8), %s285_s15, 4294967168  ;;  %s295_s22 = scalar_lea.sflag [#allocation6], %s1037_s28  ;;  %s298_s26 = scalar_lea.vmem [#allocation5], %s1040_s14 }
  0x27   : > { %896 = dma.done.wait (%p1008_p8), %s295_s22, 128  }
  0x28   : > { %898 = vsyncadd (%p1008_p8), %s295_s22, 4294967168  ;;  %p350_p3 = scmp.lt.s32.totalorder %s921_s21, 7  ;;  %vm369_vm0 = vcmask 261120   ;;  %v365_v0 = vld [vmem:[%s288_s16] sm:$0xff]  ;;  %vm398_vm2 = vcmask 64512   ;;  %v366_v12 = vld [vmem:[%s298_s26] sm:$0xff] }
  0x29   : > { %666 = vmatpush.xpose.msk.msra.mxu0 %vm369_vm0, %v365_v0  ;;  %441 = vmatpush.msra.mxu1 %v366_v12  ;;  %s671_s29 = sshll.u32 %s921_s21, 3  ;;  %s349_s16 = scalar_lea.vmem [#allocation8], %s1040_s14 }
  0x2a   : > { %s351_s9 = scalar_select %p350_p3, %s921_s21, 7 }
  0x2b   : > { %s480_s15 = scalar_lea.hbm %s1127_s5, %s671_s29  ;;  %s482_s22 = sshll.u32 %s349_s16, 4  ;;  %s483_s22 = int_to_ptr.vmem [resolvable:$true] %s482_s22 }
  0x2c   : > { %s664_s10 = sshll.u32 %s351_s9, 3  ;;  %s484_s26 = sshll.u32 %s480_s15, 4  ;;  %s485_s26 = int_to_ptr.hbm [resolvable:$true] %s484_s26 }
  0x2d   : > { %s356_s24 = scalar_lea.vmem %s1122_s0, %s664_s10  ;;  %s363_s30 = scalar_lea.vmem %s1125_s3, %s664_s10 }
  0x2e   : > { %v364_v1 = vld [vmem:[%s356_s24] sm:$0xff]  ;;  %s454_s9 = scalar_lea.sflag [#allocation9], %s1037_s28  ;;  %s825_s21 = sshra.s32 %s485_s26, 4  ;;  %s826_s21 = int_to_ptr.hbm [resolvable:$true] %s825_s21 }
  0x2f   : > { %667 = vmatmul.msk.f32.vlgmr.msra.gmra.mxu0 %vm369_vm0, %v364_v1  ;;  %v367_v2 = vld [vmem:[%s363_s30] sm:$0xff]  ;;  %s827_s10 = scalar_lea.hbm %s826_s21, 8  ;;  %s831_s24 = scalar_lea.hbm %s1127_s5, 64 }
  0x30   : > { %vm368_vm1 = vcmp.ne.s32.totalorder %v367_v2, 0  ;;  %p828_p4 = scmp.ne.s32.totalorder %s826_s21, %s827_s10  ;;  %p832_p7 = scmp.lt.s32.totalorder %s826_s21, %s1127_s5 }
  0x31   : > { %p833_p8 = scmp.lt.s32.totalorder %s831_s24, %s827_s10 }
  0x32   : > { %p829_p5 = pnand %p828_p4, %p1012_p9 }
  0x33   : > { %p834_p10 = por %p833_p8, %p832_p7 }
  0x34   : > { %p830_p6 = pneg %p829_p5 }
  0x36   : > { %p835_p12 = pnand %p834_p10, %p830_p6 }
  0xac   : > { %v393_v3 = vpop.f32.mrf.mxu0 }
  0xad   : > { %v396_v4 = vmul.f32 0.17677669, %v393_v3 }
  0xaf   : > { %v397_v5 = vsel %vm368_vm1, -1e+09, %v396_v4 }
  0xb0   : > { %v399_v6 = vsel %vm398_vm2, %v397_v5, -inf }
  0xb1   : > { %400 = vmax.xlane.f32.xlu0 %v399_v6 }
 0x124   : > { %v401_v7 = vpop.xlane.xlu0 %400 }
 0x125   : > { %v402_v8 = vsub.f32 %v397_v5, %v401_v7 }
 0x127   : > { %v403_v9 = vmul.f32 1.442695, %v402_v8 }
 0x129   : > { %747 = vpow2.f32 %v403_v9 }
 0x12f   : > { %v748_v10 = vpop.eup %747 }
 0x130   : > { %v405_v11 = vsel %vm398_vm2, %v748_v10, 0.0 }
 0x131   : > { %406 = vadd.xlane.f32.xlu0 %v405_v11 }
 0x1a4   : > { %v407_v13 = vpop.xlane.xlu0 %406 }
 0x1a5   : > { %749 = vrcp.f32 %v407_v13  ;;  %v419_v17 = vand.u32 2147483648, %v407_v13  ;;  %v417_v19 = vand.u32 2147483647, %v407_v13  ;;  %vm413_vm4 = vweird.f32 %v407_v13 }
 0x1a7   : > { %v420_v21 = vor.u32 1.1754944e-38, %v419_v17  ;;  %vm418_vm6 = vcmp.eq.f32.partialorder %v417_v19, 8.507059e+37 }
 0x1ab   : > { %v750_v14 = vpop.eup %749 }
 0x1ac   : > { %v409_v15 = vmul.f32 %v750_v14, %v407_v13  ;;  %vm414_vm3 = vweird.f32 %v750_v14 }
 0x1ad   : > { %vm415_vm5 = vmor %vm413_vm4, %vm414_vm3 }
 0x1ae   : > { %v410_v16 = vsub.f32 1.0, %v409_v15 }
 0x1b0   : > { %v411_v18 = vmul.f32 %v750_v14, %v410_v16 }
 0x1b2   : > { %v412_v20 = vadd.f32 %v750_v14, %v411_v18 }
 0x1b4   : > { %v416_v22 = vsel %vm415_vm5, %v750_v14, %v412_v20 }
 0x1b5   : > { %v421_v23 = vsel %vm418_vm6, %v420_v21, %v416_v22 }
 0x1b6   : > { %v422_v24 = vmul.f32 %v748_v10, %v421_v23 }
 0x1b8   : > { %668 = vmatmul.msk.f32.vlgmr.msra.gmra.mxu1 %vm398_vm2, %v422_v24  ;;  %446 = vst.msk [vmem:[%s349_s16] sm:$0xff] %vm398_vm2, %v422_v24 }
 0x1b9   : > { %838 = shalt.err (!%p835_p12)
}
 0x1ba   : > { %680 = dma.vmem_to_hbm [thread:$0]  (%p1012_p9), %s483_s22, 128, %s485_s26, %s454_s9  }
 0x1bb   : > { %s465_s13 = scalar_lea.hbm %s1126_s4, %s671_s29  ;;  %s342_s15 = scalar_lea.vmem [#allocation7], %s1040_s14 }
 0x1bc   : > { %s467_s16 = sshll.u32 %s342_s15, 4  ;;  %s469_s11 = sshll.u32 %s465_s13, 4  ;;  %s468_s16 = int_to_ptr.vmem [resolvable:$true] %s467_s16  ;;  %s470_s11 = int_to_ptr.hbm [resolvable:$true] %s469_s11 }
 0x1bd   : > { %s449_s21 = scalar_lea.sflag [#allocation4], %s1037_s28  ;;  %s853_s10 = sshra.s32 %s470_s11, 4  ;;  %s854_s10 = int_to_ptr.hbm [resolvable:$true] %s853_s10 }
 0x1be   : > { %s855_s17 = scalar_lea.hbm %s854_s10, 8  ;;  %s859_s29 = scalar_lea.hbm %s1126_s4, 64 }
 0x1bf   : > { %p856_p13 = scmp.ne.s32.totalorder %s854_s10, %s855_s17  ;;  %p860_p2 = scmp.lt.s32.totalorder %s854_s10, %s1126_s4 }
 0x1c0   : > { %p861_p3 = scmp.lt.s32.totalorder %s859_s29, %s855_s17 }
 0x1c1   : > { %p857_p0 = pnand %p856_p13, %p1012_p9 }
 0x1c2   : > { %p862_p4 = por %p861_p3, %p860_p2 }
 0x1c3   : > { %p858_p1 = pneg %p857_p0 }
 0x1c5   : > { %p863_p5 = pnand %p862_p4, %p858_p1 }
 0x235   : > { %v443_v25 = vpop.f32.mrf.mxu1 }
 0x236   : > { %447 = vst.msk [vmem:[%s342_s15] sm:$0xff] %vm369_vm0, %v443_v25 }
 0x237   : > { %866 = shalt.err (!%p863_p5)
}
 0x238   : > { %679 = dma.vmem_to_hbm [thread:$0]  (%p1012_p9), %s468_s16, 128, %s470_s11, %s449_s21  }
 0x239 PF: > { %p698_p6 = scmp.ge.s32.totalorder %s929_s23, 2  ;;  %s496_s28 = sand.u32 1, %s909_s18  }
 0x23a   : > { %s497_s24 = scalar_lea.sflag [#allocation4], %s496_s28 }
 0x23b   : > { %p691_p7 = pnand %p698_p6, %p1019_p11 }
 0x23d   : > { %p692_p8 = pneg %p691_p7 }
 0x23f   : > { %900 = dma.done.wait (%p692_p8), %s497_s24, 128  }
 0x240   : > { %902 = vsyncadd (%p692_p8), %s497_s24, 4294967168  ;;  %s507_s25 = scalar_lea.sflag [#allocation9], %s496_s28 }
 0x241   : > { %904 = dma.done.wait (%p692_p8), %s507_s25, 128  }
 0x242   : > { %906 = vsyncadd (%p692_p8), %s507_s25, 4294967168  ;;  %s28_s23 = sadd.s32 1, %s929_s23   ;;  %s1136_s21 = sld [smem:[#allocation14_spill]] }
 0x243   : > { %p25_p10 = scmp.ge.s32.totalorder %s28_s23, 10   ;;  %s1137_s22 = sld [smem:[#allocation15_spill]] }
 0x244   : > { %s1138_s18 = smov %s913_s19  ;;  %s1139_s19 = smov %s917_s20 }
 0x245   : > { %s1140_s20 = smov %s1017_s7  ;;  %27 = sbr.rel (!%p25_p10) target bundleno = 10 (0xa), region = 117 }
 0x24a   :  { %513 = vsyncpa [#allocation3], 1 }
 0x24b   :  { %515 = vsyncpa [#allocation3 + $0x1], 1 }
 0x24c   :  { %516 = vsyncpa [#allocation6], 1 }
 0x24d   :  { %518 = vsyncpa [#allocation6 + $0x1], 1 }
 0x24e   :  { %519 = vsyncpa [#allocation4], 1 }
 0x24f   :  { %521 = vsyncpa [#allocation4 + $0x1], 1 }
 0x250   :  { %522 = vsyncpa [#allocation9], 1 }
 0x251   :  { %524 = vsyncpa [#allocation9 + $0x1], 1 }

</bundles_post_ra>
